<compile_context>
chip_gen: v7x
topology: tpu7x:2x2x1
jax: 0.10.0
libtpu: 0.0.40
codegen_flags: <defaults>
</compile_context>

<pallas_src>
import functools

import jax
import jax.numpy as jnp
from jax.experimental import pallas as pl
from jax.experimental.pallas import tpu as pltpu

EPS = 1e-12


def tracksum_kernel(x_ref, w_ref, o_ref):
    # x_ref: (T, Nb, Ct)   w_ref: (T, Ct)   o_ref: (Nb, Ct)
    T = x_ref.shape[0]
    w = w_ref[...]                                   # (T, Ct), VMEM-resident

    # Max over tracks: leading-axis reduction -> T-1 elementwise maxima (VPU).
    a = x_ref[0]
    for t in range(1, T):
        a = jnp.maximum(a, x_ref[t])

    # Weighted sum over tracks of clamp(exp(x - a), EPS).
    s = jnp.maximum(jnp.exp(x_ref[0] - a), EPS) * w[0:1, :]
    for t in range(1, T):
        s = s + jnp.maximum(jnp.exp(x_ref[t] - a), EPS) * w[t:t + 1, :]

    o_ref[...] = a + jnp.log(s)


@functools.partial(jax.jit, static_argnames=("block_rows",))
def tracksum_forward(x, weights, *, block_rows: int = 2048):
    """x: (N, T, 1, C); weights: (T, C). Returns (N, 1, 1, C)."""
    assert x.shape[2] == 1
    N, T, _, C = x.shape
    dtype = x.dtype
    itemsize = jnp.dtype(dtype).itemsize

    # ---- lane fold: pack G samples along the lane axis when C < 128 --------
    G = max(1, 128 // C)
    n_pad = (-N) % G
    x3 = x[:, :, 0, :]                                # (N, T, C)
    xt = jnp.transpose(x3, (1, 0, 2))                 # (T, N, C)
    if n_pad:
        xt = jnp.pad(xt, ((0, 0), (0, n_pad), (0, 0)))
    Nf = N + n_pad
    rows = Nf // G
    Ct = G * C
    xf = xt.reshape(T, rows, Ct)                      # (T, rows, Ct)
    wf = jnp.tile(weights.astype(dtype), (1, G))      # (T, Ct)

    # ---- choose the sublane block over folded-N (multiple of 8) ------------
    # Keep the double-buffered working set within ~20 MiB: safe on v7x (64 MiB
    # physical VMEM) as well as v5e/v6e.
    budget = 20 * 1024 * 1024
    per_row = (2 * T + 2) * Ct * itemsize             # x (2 bufs) + out (2 bufs)
    max_rows = max(8, (budget // per_row) // 8 * 8)
    rows_round8 = -(-rows // 8) * 8
    br = int(min(block_rows, max_rows, rows_round8))
    br = max(8, (br // 8) * 8)
    rows_padded = -(-rows // br) * br
    if rows_padded != rows:
        xf = jnp.pad(xf, ((0, 0), (0, rows_padded - rows), (0, 0)))

    grid = (rows_padded // br,)

    yf = pl.pallas_call(
        tracksum_kernel,
        out_shape=jax.ShapeDtypeStruct((rows_padded, Ct), dtype),
        grid=grid,
        in_specs=[
            pl.BlockSpec((T, br, Ct), lambda i: (0, i, 0)),
            pl.BlockSpec((T, Ct), lambda i: (0, 0)),   # constant: stays resident
        ],
        out_specs=pl.BlockSpec((br, Ct), lambda i: (i, 0)),
        compiler_params=pltpu.CompilerParams(
            dimension_semantics=("parallel",),
            vmem_limit_bytes=48 * 1024 * 1024,
        ),
    )(xf, wf)

    # Undo padding / lane fold: (rows_padded, Ct) -> (N, C) -> (N, 1, 1, C)
    y = yf[:rows].reshape(Nf, C)[:N]
    return y[:, None, None, :]


def make_tracksum_weights(key, tracks, channels):
    """Deterministic init matching ProductSumLayer.__init__ for TrackSum."""
    w = jax.random.uniform(key, (tracks, channels), dtype=jnp.float32)
    w = w / jnp.clip(jnp.sum(w, axis=0, keepdims=True), EPS, None)
    return w


def tracksum_reference(x, weights):
    a = jnp.max(x, axis=1)                                        # (N, V, C)
    exa = jnp.maximum(jnp.exp(x - a[:, None]), EPS)               # (N, T, V, C)
    y = a + jnp.log(jnp.einsum('ntvc,tc->nvc', exa, weights))
    return y[:, None]


if __name__ == "__main__":
    key = jax.random.PRNGKey(0)
    kx1, kw1, kx2, kw2 = jax.random.split(key, 4)

    # --- small canonical test (matches the module's expected shapes) --------
    N, T, V, C = 2, 4, 1, 16
    x = jax.random.normal(kx1, (N, T, V, C), dtype=jnp.float32)
    weights = make_tracksum_weights(kw1, T, C)

    out = tracksum_forward(x, weights)
    out = jax.block_until_ready(out)
    ref = tracksum_reference(x, weights)
    assert out.shape == (N, 1, V, C), out.shape
    assert jnp.allclose(out, ref, atol=1e-5, rtol=1e-5)

    # --- multi-block test: exercises lane folding, N padding, grid tail -----
    N2, T2, C2 = 130, 5, 24
    x2 = jax.random.normal(kx2, (N2, T2, 1, C2), dtype=jnp.float32)
    w2 = make_tracksum_weights(kw2, T2, C2)
    out2 = jax.block_until_ready(tracksum_forward(x2, w2, block_rows=8))
    ref2 = tracksum_reference(x2, w2)
    assert out2.shape == (N2, 1, 1, C2), out2.shape
    assert jnp.allclose(out2, ref2, atol=1e-5, rtol=1e-5)

    print("KERNEL_OK")
</pallas_src>

<mosaic_0001>
module attributes {stable_mosaic.version = 11 : i64} {
  func.func @tracksum_kernel(%arg0: i32, %arg1: memref<4x8x128xf32, #tpu.memory_space<vmem>>, %arg2: memref<4x128xf32, #tpu.memory_space<vmem>>, %arg3: memref<8x128xf32, #tpu.memory_space<vmem>>) attributes {dimension_semantics = [#tpu.dimension_semantics<parallel>], iteration_bounds = array<i64: 1>, scalar_prefetch = 0 : i64, scratch_operands = 0 : i64, tpu.core_type = #tpu.core_type<tc>, window_params = [{transform_indices = @transform_0, window_bounds = array<i64: 4, 8, 128>}, {pipeline_mode = #tpu.pipeline_mode<synchronous>, transform_indices = @transform_1, window_bounds = array<i64: 4, 128>}, {transform_indices = @transform_2, window_bounds = array<i64: 8, 128>}]} {
    %c0 = arith.constant 0 : index
    %c0_0 = arith.constant 0 : index
    %0 = vector.load %arg2[%c0, %c0_0] : memref<4x128xf32, #tpu.memory_space<vmem>>, vector<4x128xf32>
    %c0_1 = arith.constant 0 : index
    %c0_2 = arith.constant 0 : index
    %c0_3 = arith.constant 0 : index
    %1 = vector.load %arg1[%c0_1, %c0_2, %c0_3] : memref<4x8x128xf32, #tpu.memory_space<vmem>>, vector<1x8x128xf32>
    %2 = vector.shape_cast %1 : vector<1x8x128xf32> to vector<8x128xf32>
    %c1 = arith.constant 1 : index
    %c0_4 = arith.constant 0 : index
    %c0_5 = arith.constant 0 : index
    %3 = vector.load %arg1[%c1, %c0_4, %c0_5] : memref<4x8x128xf32, #tpu.memory_space<vmem>>, vector<1x8x128xf32>
    %4 = vector.shape_cast %3 : vector<1x8x128xf32> to vector<8x128xf32>
    %5 = arith.maximumf %2, %4 : vector<8x128xf32>
    %c2 = arith.constant 2 : index
    %c0_6 = arith.constant 0 : index
    %c0_7 = arith.constant 0 : index
    %6 = vector.load %arg1[%c2, %c0_6, %c0_7] : memref<4x8x128xf32, #tpu.memory_space<vmem>>, vector<1x8x128xf32>
    %7 = vector.shape_cast %6 : vector<1x8x128xf32> to vector<8x128xf32>
    %8 = arith.maximumf %5, %7 : vector<8x128xf32>
    %c3 = arith.constant 3 : index
    %c0_8 = arith.constant 0 : index
    %c0_9 = arith.constant 0 : index
    %9 = vector.load %arg1[%c3, %c0_8, %c0_9] : memref<4x8x128xf32, #tpu.memory_space<vmem>>, vector<1x8x128xf32>
    %10 = vector.shape_cast %9 : vector<1x8x128xf32> to vector<8x128xf32>
    %11 = arith.maximumf %8, %10 : vector<8x128xf32>
    %c0_10 = arith.constant 0 : index
    %c0_11 = arith.constant 0 : index
    %c0_12 = arith.constant 0 : index
    %12 = vector.load %arg1[%c0_10, %c0_11, %c0_12] : memref<4x8x128xf32, #tpu.memory_space<vmem>>, vector<1x8x128xf32>
    %13 = vector.shape_cast %12 : vector<1x8x128xf32> to vector<8x128xf32>
    %14 = arith.subf %13, %11 : vector<8x128xf32>
    %15 = math.exp %14 : vector<8x128xf32>
    %cst = arith.constant 9.99999996E-13 : f32
    %16 = vector.broadcast %cst : f32 to vector<8x128xf32>
    %17 = arith.maximumf %15, %16 : vector<8x128xf32>
    %18 = vector.extract_strided_slice %0 {offsets = [0, 0], sizes = [1, 128], strides = [1, 1]} : vector<4x128xf32> to vector<1x128xf32>
    %19 = vector.broadcast %18 : vector<1x128xf32> to vector<8x128xf32>
    %20 = arith.mulf %17, %19 : vector<8x128xf32>
    %c1_13 = arith.constant 1 : index
    %c0_14 = arith.constant 0 : index
    %c0_15 = arith.constant 0 : index
    %21 = vector.load %arg1[%c1_13, %c0_14, %c0_15] : memref<4x8x128xf32, #tpu.memory_space<vmem>>, vector<1x8x128xf32>
    %22 = vector.shape_cast %21 : vector<1x8x128xf32> to vector<8x128xf32>
    %23 = arith.subf %22, %11 : vector<8x128xf32>
    %24 = math.exp %23 : vector<8x128xf32>
    %cst_16 = arith.constant 9.99999996E-13 : f32
    %25 = vector.broadcast %cst_16 : f32 to vector<8x128xf32>
    %26 = arith.maximumf %24, %25 : vector<8x128xf32>
    %27 = vector.extract_strided_slice %0 {offsets = [1, 0], sizes = [1, 128], strides = [1, 1]} : vector<4x128xf32> to vector<1x128xf32>
    %28 = vector.broadcast %27 : vector<1x128xf32> to vector<8x128xf32>
    %29 = arith.mulf %26, %28 : vector<8x128xf32>
    %30 = arith.addf %20, %29 : vector<8x128xf32>
    %c2_17 = arith.constant 2 : index
    %c0_18 = arith.constant 0 : index
    %c0_19 = arith.constant 0 : index
    %31 = vector.load %arg1[%c2_17, %c0_18, %c0_19] : memref<4x8x128xf32, #tpu.memory_space<vmem>>, vector<1x8x128xf32>
    %32 = vector.shape_cast %31 : vector<1x8x128xf32> to vector<8x128xf32>
    %33 = arith.subf %32, %11 : vector<8x128xf32>
    %34 = math.exp %33 : vector<8x128xf32>
    %cst_20 = arith.constant 9.99999996E-13 : f32
    %35 = vector.broadcast %cst_20 : f32 to vector<8x128xf32>
    %36 = arith.maximumf %34, %35 : vector<8x128xf32>
    %37 = vector.extract_strided_slice %0 {offsets = [2, 0], sizes = [1, 128], strides = [1, 1]} : vector<4x128xf32> to vector<1x128xf32>
    %38 = vector.broadcast %37 : vector<1x128xf32> to vector<8x128xf32>
    %39 = arith.mulf %36, %38 : vector<8x128xf32>
    %40 = arith.addf %30, %39 : vector<8x128xf32>
    %c3_21 = arith.constant 3 : index
    %c0_22 = arith.constant 0 : index
    %c0_23 = arith.constant 0 : index
    %41 = vector.load %arg1[%c3_21, %c0_22, %c0_23] : memref<4x8x128xf32, #tpu.memory_space<vmem>>, vector<1x8x128xf32>
    %42 = vector.shape_cast %41 : vector<1x8x128xf32> to vector<8x128xf32>
    %43 = arith.subf %42, %11 : vector<8x128xf32>
    %44 = math.exp %43 : vector<8x128xf32>
    %cst_24 = arith.constant 9.99999996E-13 : f32
    %45 = vector.broadcast %cst_24 : f32 to vector<8x128xf32>
    %46 = arith.maximumf %44, %45 : vector<8x128xf32>
    %47 = vector.extract_strided_slice %0 {offsets = [3, 0], sizes = [1, 128], strides = [1, 1]} : vector<4x128xf32> to vector<1x128xf32>
    %48 = vector.broadcast %47 : vector<1x128xf32> to vector<8x128xf32>
    %49 = arith.mulf %46, %48 : vector<8x128xf32>
    %50 = arith.addf %40, %49 : vector<8x128xf32>
    %51 = math.log %50 : vector<8x128xf32>
    %52 = arith.addf %11, %51 : vector<8x128xf32>
    %c0_25 = arith.constant 0 : index
    %c0_26 = arith.constant 0 : index
    %53 = vector.load %arg3[%c0_25, %c0_26] : memref<8x128xf32, #tpu.memory_space<vmem>>, vector<8x128xf32>
    tpu.vector_store %arg3[%c0_25, %c0_26], %52 {strides = array<i32>} : memref<8x128xf32, #tpu.memory_space<vmem>>, vector<8x128xf32>,
    return
  }
  func.func @transform_0(%arg0: i32) -> (i32, i32, i32) {
    %c0_i32 = arith.constant 0 : i32
    %c0_i32_0 = arith.constant 0 : i32
    %c0_i32_1 = arith.constant 0 : i32
    return %c0_i32, %arg0, %c0_i32_0 : i32, i32, i32
  }
  func.func @transform_1(%arg0: i32) -> (i32, i32) {
    %c0_i32 = arith.constant 0 : i32
    %c0_i32_0 = arith.constant 0 : i32
    %c0_i32_1 = arith.constant 0 : i32
    return %c0_i32, %c0_i32_0 : i32, i32
  }
  func.func @transform_2(%arg0: i32) -> (i32, i32) {
    %c0_i32 = arith.constant 0 : i32
    %c0_i32_0 = arith.constant 0 : i32
    return %arg0, %c0_i32 : i32, i32
  }
}

</mosaic_0001>

<bundles_post_ra>
// kernel: tile.9
= control target key start
LH: loop header
LB: loop body
LE: loop exit
PB: predicated region body
PF: predicated region fallthrough
CT: control target
= control target key end

     0   :  { %s67_s8 = smov 112   ;;  %s68_s11 = smov 80   ;;  %vm3_vm0 = vcmask 130048   ;;  %vm9_vm1 = vcmask 1048448   ;;  %vm15_vm2 = vcmask 917248   ;;  %vm21_vm3 = vcmask 786048   ;;  %s111_s0 = inlined_call_operand.vmem [shape: f32[4,8,16], index: 0, kind: input, shape index: {}]   ;;  %s112_s1 = inlined_call_operand.vmem [shape: f32[4,128], index: 1, kind: output, shape index: {}]  }
   0x1   :  { %v53_v0 = vld [vmem:[%s111_s0 + $0x7] ss:$8 sm:$0xf]   ;;  %v55_v1 = vld [vmem:[%s111_s0 + $0x5] ss:$8 sm:$0xf]  }
   0x2   :  { %7 = vrot.lane.b32.xlu0 %v53_v0, %s67_s8  ;;  %19 = vrot.lane.b32.xlu1 %v55_v1, %s68_s11  ;;  %v54_v2 = vld [vmem:[%s111_s0 + $0x6] ss:$8 sm:$0xf]   ;;  %v56_v3 = vld [vmem:[%s111_s0 + $0x4] ss:$8 sm:$0xf]  }
   0x3   :  { %s69_s16 = smov 96   ;;  %v2_v4 = vld [vmem:[%s111_s0] ss:$8 sm:$0xf]   ;;  %s70_s19 = smov 64   ;;  %vm27_vm4 = vcmask 654848  }
   0x4   :  { %v57_v5 = vld [vmem:[%s111_s0 + $0x3] ss:$8 sm:$0xf]   ;;  %4 = vst.msk [vmem:[#allocation0] sm:$0xf] %vm3_vm0, %v2_v4   ;;  %s71_s24 = smov 48  }
   0x5   :  { %v58_v6 = vld [vmem:[%s111_s0 + $0x2] ss:$8 sm:$0xf]   ;;  %s72_s25 = smov 32   ;;  %vm33_vm5 = vcmask 523648   ;;  %vm39_vm6 = vcmask 392448  }
   0x6   :  { %13 = vrot.lane.b32.xlu0 %v54_v2, %s69_s16  ;;  %25 = vrot.lane.b32.xlu1 %v56_v3, %s70_s19  ;;  %v59_v7 = vld [vmem:[%s111_s0 + $0x1] ss:$8 sm:$0xf]   ;;  %s73_s0 = smov 16   ;;  %vm45_vm7 = vcmask 261248  }
   0xa   :  { %31 = vrot.lane.b32.xlu0 %v57_v5, %s71_s24  ;;  %37 = vrot.lane.b32.xlu1 %v58_v6, %s72_s25 }
   0xe   :  { %43 = vrot.lane.b32.xlu0 %v59_v7, %s73_s0 }
  0x74   :  { %v8_v8 = vpop.permute.xlu0 %7   ;;  %v20_v9 = vpop.permute.xlu1 %19  }
  0x75   :  { %10 = vst.msk [vmem:[#allocation0] sm:$0xf] %vm9_vm1, %v8_v8  }
  0x78   :  { %v14_v10 = vpop.permute.xlu0 %13   ;;  %v26_v11 = vpop.permute.xlu1 %25  }
  0x79   :  { %16 = vst.msk [vmem:[#allocation0] sm:$0xf] %vm15_vm2, %v14_v10  }
  0x7a   :  { %22 = vst.msk [vmem:[#allocation0] sm:$0xf] %vm21_vm3, %v20_v9  }
  0x7b   :  { %28 = vst.msk [vmem:[#allocation0] sm:$0xf] %vm27_vm4, %v26_v11  }
  0x7c   :  { %v32_v12 = vpop.permute.xlu0 %31   ;;  %v38_v13 = vpop.permute.xlu1 %37  }
  0x7d   :  { %34 = vst.msk [vmem:[#allocation0] sm:$0xf] %vm33_vm5, %v32_v12  }
  0x7e   :  { %40 = vst.msk [vmem:[#allocation0] sm:$0xf] %vm39_vm6, %v38_v13  }
  0x80   :  { %v44_v14 = vpop.permute.xlu0 %43  }
  0x81   :  { %46 = vst.msk [vmem:[#allocation0] sm:$0xf] %vm45_vm7, %v44_v14  }
  0x88   :  { %v50_v15 = vld [vmem:[#allocation0] sm:$0xf] }
  0x89   :  { %52 = vst [vmem:[%s112_s1] sm:$0xf] %v50_v15 }

// kernel: tracksum_forward.1
= control target key start
LH: loop header
LB: loop body
LE: loop exit
PB: predicated region body
PF: predicated region fallthrough
CT: control target
= control target key end

     0   :  { %v26_v11 = vlaneseq  ;;  %s115_s0 = inlined_call_operand.vmem [shape: f32[4,8,128], index: 0, kind: input, shape index: {}]   ;;  %s116_s1 = inlined_call_operand.vmem [shape: f32[4,128], index: 1, kind: input, shape index: {}]   ;;  %s117_s2 = inlined_call_operand.vmem [shape: f32[8,128], index: 2, kind: output, shape index: {}]  }
   0x1   :  { %v12_v0 = vld [vmem:[%s115_s0] sm:$0xff]  ;;  %v69_v1 = vld [vmem:[%s115_s0 + $0x8] sm:$0xff]  ;;  %v70_v3 = vld [vmem:[%s115_s0 + $0x10] sm:$0xff] }
   0x2   :  { %v15_v2 = vmax.f32 %v12_v0, %v69_v1  ;;  %v71_v4 = vld [vmem:[%s115_s0 + $0x18] sm:$0xff]  ;;  %v27_v16 = vshrl.u32 %v26_v11, 7  ;;  %v11_v18 = vld [vmem:[%s116_s1] sm:$0xf] }
   0x4   :  { %v18_v5 = vmax.f32 %v15_v2, %v70_v3  ;;  %v28_v17 = vsub.s32 0, %v27_v16  ;;  %v37_v19 = vsub.s32 1, %v27_v16  ;;  %v47_v20 = vsub.s32 2, %v27_v16 }
   0x5   :  { %v57_v21 = vsub.s32 3, %v27_v16 }
   0x6   :  { %v21_v6 = vmax.f32 %v18_v5, %v71_v4  ;;  %v29_v22 = vrot.slane %v11_v18, %v28_v17  ;;  %v38_v24 = vrot.slane %v11_v18, %v37_v19  ;;  %v48_v27 = vrot.slane %v11_v18, %v47_v20 }
   0x7   :  { %v58_v30 = vrot.slane %v11_v18, %v57_v21 }
   0x8   :  { %v22_v7 = vsub.f32 %v12_v0, %v21_v6  ;;  %v31_v8 = vsub.f32 %v69_v1, %v21_v6  ;;  %v41_v9 = vsub.f32 %v70_v3, %v21_v6  ;;  %v51_v10 = vsub.f32 %v71_v4, %v21_v6 }
   0xa   :  { %v23_v12 = vmul.f32 1.442695, %v22_v7  ;;  %v32_v13 = vmul.f32 1.442695, %v31_v8  ;;  %v42_v14 = vmul.f32 1.442695, %v41_v9 }
   0xb   :  { %v52_v15 = vmul.f32 1.442695, %v51_v10 }
   0xc   :  { %72 = vpow2.f32 %v23_v12 }
   0xd   :  { %74 = vpow2.f32 %v32_v13 }
   0xe   :  { %76 = vpow2.f32 %v42_v14 }
   0xf   :  { %78 = vpow2.f32 %v52_v15 }
  0x16   :  { %v73_v23 = vpop.eup %72 }
  0x17   :  { %v75_v25 = vpop.eup %74  ;;  %v25_v26 = vmax.f32 %v73_v23, 1e-12 }
  0x18   :  { %v77_v28 = vpop.eup %76  ;;  %v34_v29 = vmax.f32 %v75_v25, 1e-12 }
  0x19   :  { %v79_v31 = vpop.eup %78  ;;  %v30_v32 = vmul.f32 %v29_v22, %v25_v26  ;;  %v44_v33 = vmax.f32 %v77_v28, 1e-12 }
  0x1a   :  { %v39_v34 = vmul.f32 %v38_v24, %v34_v29  ;;  %v54_v35 = vmax.f32 %v79_v31, 1e-12 }
  0x1b   :  { %v49_v36 = vmul.f32 %v48_v27, %v44_v33 }
  0x1c   :  { %v40_v37 = vadd.f32 %v39_v34, %v30_v32  ;;  %v59_v38 = vmul.f32 %v58_v30, %v54_v35 }
  0x1e   :  { %v50_v39 = vadd.f32 %v49_v36, %v40_v37 }
  0x20   :  { %v60_v40 = vadd.f32 %v59_v38, %v50_v39 }
  0x22   :  { %80 = vlog2.f32 %v60_v40 }
  0x2c   :  { %v81_v41 = vpop.eup %80 }
  0x2d   :  { %v62_v42 = vmul.f32 0.6931472, %v81_v41 }
  0x2f   :  { %v63_v43 = vadd.f32 %v62_v42, %v21_v6 }
  0x31   :  { %64 = vst [vmem:[%s117_s2] sm:$0xff] %v63_v43 }

</bundles_post_ra>
